<compile_context>
chip_gen: v7x
topology: tpu7x:2x2x1
jax: 0.10.0
libtpu: 0.0.40
codegen_flags: <defaults>
</compile_context>

<pallas_src>
import functools

import jax
import jax.numpy as jnp
from jax.experimental import pallas as pl
from jax.experimental.pallas import tpu as pltpu


def gate_kernel(x_ref, zcb_ref, c_ref, w_ref, o_ref):
    # x_ref:   (1, tS, d) f32   one seq tile of one batch element
    # zcb_ref: (1, 1, d)  f32   control @ W_ctrl^T + bias for this batch element
    # c_ref:   (1, 1, d)  f32   control row for this batch element
    # w_ref:   (d, d)     bf16  W_in^T (resident; constant index_map)
    # o_ref:   (1, tS, d) f32
    x = x_ref[0]                                                    # (tS, d) f32
    z = jnp.dot(x.astype(jnp.bfloat16), w_ref[...],
                preferred_element_type=jnp.float32)                 # MXU, f32 acc
    gate = jnp.tanh(z + zcb_ref[0])                                 # (tS, d), EUP tanh
    # out = gate*c + (1-gate)*x  ==  x + gate*(c - x)   (one fewer vmul/broadcast)
    o_ref[0] = (x + gate * (c_ref[0] - x)).astype(o_ref.dtype)


def _pick_seq_tile(seq_len, d, tile_budget_bytes):
    """Largest multiple-of-8 divisor of seq_len whose double-buffered f32
    in+out blocks (4 * tS * d * 4B) fit the budget."""
    best = None
    for t in range(8, seq_len + 1, 8):
        if seq_len % t == 0 and 4 * t * d * 4 <= tile_budget_bytes:
            best = t
    if best is None:
        # Ragged / tiny sequence: a single full-extent block is always a legal
        # BlockSpec (block dim == full array dim).
        best = seq_len
    return best


@jax.jit
def gate_forward(x, control, weight, bias):
    """Pallas implementation of Gate.forward (mask=None path).

    x:       (bs, seq_len, d)   float32
    control: (bs, 1, d)         float32   (d_control must equal d, as the
                                           PyTorch elementwise mix implies)
    weight:  (d, 2*d)           float32   (nn.Linear weight, out x in)
    bias:    (d,)               float32
    returns: (bs, seq_len, d)   float32
    """
    bs, seq_len, d = x.shape
    assert control.shape == (bs, 1, d), "elementwise gate mix requires d_control == d_in"
    assert weight.shape == (d, 2 * d) and bias.shape == (d,)

    # ---- Wrapper-side prep (fused/cached by jit; pre-transpose once) ----------
    w_in = weight[:, :d].T.astype(jnp.bfloat16)            # (d, d)  W_in^T, bf16 MXU feed
    w_c = weight[:, d:]                                    # (d, d)  W_ctrl
    c_row = control[:, 0, :]                               # (bs, d)
    # Hoisted control path: zcb = c @ W_ctrl^T + b  -> tiny (bs, 1, d) array.
    zcb = (c_row @ w_c.T + bias).astype(jnp.float32).reshape(bs, 1, d)
    c_mix = c_row.astype(jnp.float32).reshape(bs, 1, d)

    # ---- VMEM budget (headroom under v7x's 64 MiB physical VMEM) -------------
    vmem_budget = 40 * 1024 * 1024
    weight_bytes = 2 * d * d * 2                           # bf16, assume double-buffered
    tile_budget = max(vmem_budget - weight_bytes, 4 * 8 * d * 4)
    tS = _pick_seq_tile(seq_len, d, tile_budget)
    grid = (bs, seq_len // tS if seq_len % tS == 0 else 1)

    return pl.pallas_call(
        gate_kernel,
        out_shape=jax.ShapeDtypeStruct((bs, seq_len, d), x.dtype),
        grid_spec=pltpu.PrefetchScalarGridSpec(
            num_scalar_prefetch=0,
            grid=grid,
            in_specs=[
                pl.BlockSpec((1, tS, d), lambda b, s: (b, s, 0)),   # x seq tile
                pl.BlockSpec((1, 1, d), lambda b, s: (b, 0, 0)),    # zcb row
                pl.BlockSpec((1, 1, d), lambda b, s: (b, 0, 0)),    # control row
                pl.BlockSpec((d, d), lambda b, s: (0, 0)),          # W_in^T (resident)
            ],
            out_specs=pl.BlockSpec((1, tS, d), lambda b, s: (b, s, 0)),
        ),
        compiler_params=pltpu.CompilerParams(
            dimension_semantics=("parallel", "parallel"),
            vmem_limit_bytes=48 * 1024 * 1024,
        ),
    )(x, zcb, c_mix, w_in)


def gate_reference(x, control, weight, bias):
    """Pure-JAX f32 reference mirroring the PyTorch forward (mask=None)."""
    bs, seq_len, d = x.shape
    c_exp = jnp.broadcast_to(control, (bs, seq_len, d))
    xc = jnp.concatenate([x, c_exp], axis=-1)                        # (bs, S, 2d)
    gate = jnp.tanh(jnp.einsum("bsk,dk->bsd", xc, weight) + bias)
    return gate * c_exp + (1.0 - gate) * x


if __name__ == "__main__":
    # Small shapes consistent with the module. d=128 keeps the feature dim
    # lane-dense (one full vreg lane width).
    bs, seq_len, d = 2, 64, 128

    key = jax.random.PRNGKey(0)
    k_x, k_c, k_w, k_b = jax.random.split(key, 4)

    x = jax.random.normal(k_x, (bs, seq_len, d), dtype=jnp.float32)
    control = jax.random.normal(k_c, (bs, 1, d), dtype=jnp.float32)

    # nn.Linear(d_in + d_control, d_in)-shaped params (PyTorch default fan-in init).
    fan_in = 2 * d
    bound = 1.0 / (fan_in ** 0.5)
    weight = jax.random.uniform(k_w, (d, 2 * d), jnp.float32, -bound, bound)
    bias = jax.random.uniform(k_b, (d,), jnp.float32, -bound, bound)

    out = gate_forward(x, control, weight, bias)
    out = jax.block_until_ready(out)

    ref = gate_reference(x, control, weight, bias)
    assert out.shape == (bs, seq_len, d)
    # Tolerance loosened vs the pure-f32 reference because the MXU is fed bf16
    # operands (f32 accumulation); typical error is ~1e-3.
    assert jnp.allclose(out, ref, atol=5e-2, rtol=5e-2), "mismatch vs reference"

    print("KERNEL_OK")
</pallas_src>

<mosaic_0001>
module attributes {stable_mosaic.version = 11 : i64} {
  func.func @gate_kernel(%arg0: i32, %arg1: i32, %arg2: memref<1x64x128xf32, #tpu.memory_space<vmem>>, %arg3: memref<1x1x128xf32, #tpu.memory_space<vmem>>, %arg4: memref<1x1x128xf32, #tpu.memory_space<vmem>>, %arg5: memref<128x128xbf16, #tpu.memory_space<vmem>>, %arg6: memref<1x64x128xf32, #tpu.memory_space<vmem>>) attributes {dimension_semantics = [#tpu.dimension_semantics<parallel>, #tpu.dimension_semantics<parallel>], iteration_bounds = array<i64: 2, 1>, scalar_prefetch = 0 : i64, scratch_operands = 0 : i64, tpu.core_type = #tpu.core_type<tc>, window_params = [{transform_indices = @transform_0, window_bounds = array<i64: 1, 64, 128>}, {transform_indices = @transform_1, window_bounds = array<i64: 1, 1, 128>}, {transform_indices = @transform_2, window_bounds = array<i64: 1, 1, 128>}, {pipeline_mode = #tpu.pipeline_mode<synchronous>, transform_indices = @transform_3, window_bounds = array<i64: 128, 128>}, {transform_indices = @transform_4, window_bounds = array<i64: 1, 64, 128>}]} {
    %c0 = arith.constant 0 : index
    %c0_0 = arith.constant 0 : index
    %c0_1 = arith.constant 0 : index
    %0 = vector.load %arg2[%c0, %c0_0, %c0_1] : memref<1x64x128xf32, #tpu.memory_space<vmem>>, vector<1x64x128xf32>
    %1 = vector.shape_cast %0 : vector<1x64x128xf32> to vector<64x128xf32>
    %2 = arith.truncf %1 : vector<64x128xf32> to vector<64x128xbf16>
    %c0_2 = arith.constant 0 : index
    %c0_3 = arith.constant 0 : index
    %3 = vector.load %arg5[%c0_2, %c0_3] : memref<128x128xbf16, #tpu.memory_space<vmem>>, vector<128x128xbf16>
    %cst = arith.constant dense<0.000000e+00> : vector<64x128xf32>
    %4 = tpu.matmul %2, %3, %cst {dimension_numbers = #tpu.dot_dimension_numbers<[1], [0], [0], [1], [0, 0, 1, 1], [], []>} : vector<64x128xbf16>, vector<128x128xbf16>, vector<64x128xf32> -> vector<64x128xf32>
    %c0_4 = arith.constant 0 : index
    %c0_5 = arith.constant 0 : index
    %c0_6 = arith.constant 0 : index
    %5 = vector.load %arg3[%c0_4, %c0_5, %c0_6] : memref<1x1x128xf32, #tpu.memory_space<vmem>>, vector<1x1x128xf32>
    %6 = vector.shape_cast %5 : vector<1x1x128xf32> to vector<1x128xf32>
    %7 = vector.broadcast %6 : vector<1x128xf32> to vector<64x128xf32>
    %8 = arith.addf %4, %7 : vector<64x128xf32>
    %9 = math.tanh %8 : vector<64x128xf32>
    %c0_7 = arith.constant 0 : index
    %c0_8 = arith.constant 0 : index
    %c0_9 = arith.constant 0 : index
    %10 = vector.load %arg4[%c0_7, %c0_8, %c0_9] : memref<1x1x128xf32, #tpu.memory_space<vmem>>, vector<1x1x128xf32>
    %11 = vector.shape_cast %10 : vector<1x1x128xf32> to vector<1x128xf32>
    %12 = vector.broadcast %11 : vector<1x128xf32> to vector<64x128xf32>
    %13 = arith.subf %12, %1 : vector<64x128xf32>
    %14 = arith.mulf %9, %13 : vector<64x128xf32>
    %15 = arith.addf %1, %14 : vector<64x128xf32>
    %c0_10 = arith.constant 0 : index
    %c0_11 = arith.constant 0 : index
    %c0_12 = arith.constant 0 : index
    %16 = vector.load %arg6[%c0_10, %c0_11, %c0_12] : memref<1x64x128xf32, #tpu.memory_space<vmem>>, vector<1x64x128xf32>
    %17 = vector.shape_cast %16 : vector<1x64x128xf32> to vector<64x128xf32>
    %18 = vector.shape_cast %15 : vector<64x128xf32> to vector<1x64x128xf32>
    tpu.vector_store %arg6[%c0_10, %c0_11, %c0_12], %18 {strides = array<i32>} : memref<1x64x128xf32, #tpu.memory_space<vmem>>, vector<1x64x128xf32>,
    return
  }
  func.func @transform_0(%arg0: i32, %arg1: i32) -> (i32, i32, i32) {
    %c0_i32 = arith.constant 0 : i32
    %c0_i32_0 = arith.constant 0 : i32
    return %arg0, %arg1, %c0_i32 : i32, i32, i32
  }
  func.func @transform_1(%arg0: i32, %arg1: i32) -> (i32, i32, i32) {
    %c0_i32 = arith.constant 0 : i32
    %c0_i32_0 = arith.constant 0 : i32
    %c0_i32_1 = arith.constant 0 : i32
    return %arg0, %c0_i32, %c0_i32_0 : i32, i32, i32
  }
  func.func @transform_2(%arg0: i32, %arg1: i32) -> (i32, i32, i32) {
    %c0_i32 = arith.constant 0 : i32
    %c0_i32_0 = arith.constant 0 : i32
    %c0_i32_1 = arith.constant 0 : i32
    return %arg0, %c0_i32, %c0_i32_0 : i32, i32, i32
  }
  func.func @transform_3(%arg0: i32, %arg1: i32) -> (i32, i32) {
    %c0_i32 = arith.constant 0 : i32
    %c0_i32_0 = arith.constant 0 : i32
    %c0_i32_1 = arith.constant 0 : i32
    return %c0_i32, %c0_i32_0 : i32, i32
  }
  func.func @transform_4(%arg0: i32, %arg1: i32) -> (i32, i32, i32) {
    %c0_i32 = arith.constant 0 : i32
    %c0_i32_0 = arith.constant 0 : i32
    return %arg0, %arg1, %c0_i32 : i32, i32, i32
  }
}

</mosaic_0001>

<bundles_post_ra>
// kernel: gate_forward.1
= control target key start
LH: loop header
LB: loop body
LE: loop exit
PB: predicated region body
PF: predicated region fallthrough
CT: control target
= control target key end

     0   :  { %9 = vsyncpa [#allocation3], 0  ;;  %s1024_s0 = inlined_call_operand.vmem [shape: f32[2,64,128], index: 0, kind: input, shape index: {}]   ;;  %s1025_s1 = inlined_call_operand.vmem [shape: f32[2,1,128], index: 1, kind: input, shape index: {}]   ;;  %s1026_s2 = inlined_call_operand.vmem [shape: f32[2,1,128], index: 2, kind: input, shape index: {}]   ;;  %s1027_s3 = inlined_call_operand.vmem [shape: bf16[128,128], index: 3, kind: input, shape index: {}]   ;;  %s1028_s4 = inlined_call_operand.hbm [shape: f32[2,64,128], index: 4, kind: output, shape index: {}]  }
   0x1   :  { %11 = vsyncpa [#allocation3 + $0x1], 0  ;;  %s830_s15 = smov 0   ;;  %s832_s16 = smov 0  }
   0x2   :  { %s834_s17 = smov 0   ;;  %s836_s18 = smov 0  }
   0x3   :  { %s838_s19 = smov 0   ;;  %s840_s20 = smov 0  }
   0x4 LB: > { %s564_s21 = sadd.s32 4294967295, %s800_s20   ;;  %s565_s22 = sadd.s32 4294967294, %s800_s20   ;;  %s800_s20 = sphi %s840_s20, %s17_s20   ;;  %s796_s19 = sphi %s838_s19, %s1035_s19   ;;  %s792_s18 = sphi %s836_s18, %s1034_s18   ;;  %s788_s17 = sphi %s834_s17, %s1033_s17   ;;  %s784_s16 = sphi %s832_s16, %s1032_s16   ;;  %s780_s15 = sphi %s830_s15, %s1031_s15  }
   0x5   : > { %s29_s23 = sadd.s32 1, %s796_s19  ;;  %s139_s24 = sadd.s32 1, %s788_s17 }
   0x6   : > { %p31_p0 = scmp.ge.s32.totalorder %s29_s23, 2  ;;  %p149_p1 = scmp.ne.s32.totalorder %s788_s17, %s784_s16 }
   0x7   : > { %p150_p2 = scmp.eq.s32.totalorder %s564_s21, 1  ;;  %p155_p3 = scmp.ne.s32.totalorder %s784_s16, %s780_s15 }
   0x8   : > { %s1037_s23 = smov (%p31_p0, %s29_s23), 0  ;;  %p156_p5 = scmp.eq.s32.totalorder %s565_s22, 1 }
   0x9   : > { %p870_p4 = por %p150_p2, %p149_p1  ;;  %s134_s26 = ssub.s32 %s796_s19, %s1037_s23 }
   0xa   : > { %p568_p6 = scmp.ge.s32.totalorder %s800_s20, 1  ;;  %p137_p7 = scmp.eq.s32.totalorder %s134_s26, 0 }
   0xb   : > { %p877_p8 = por %p156_p5, %p155_p3  ;;  %p202_p9 = scmp.lt.s32.totalorder %s800_s20, 3 }
   0xc   : > { %s883_s28 = scalar_select %p137_p7, %s788_s17, %s139_s24  }
   0xd   : > { %p203_p10 = pnand %p568_p6, %p202_p9 }
   0xe   : > { %v698_v0 = vld [vmem:[%s1027_s3] sm:$0xff] (!%p203_p10)   ;;  %p239_p11 = scmp.lt.s32.totalorder (!%p203_p10), %s792_s18, 1  ;;  %v699_v1 = vld [vmem:[%s1027_s3 + $0x8] sm:$0xff] (!%p203_p10)   ;;  %v700_v2 = vld [vmem:[%s1027_s3 + $0x10] sm:$0xff] (!%p203_p10)   ;;  %s235_s21 = sand.u32 (!%p203_p10), 1, %s784_s16  }
   0xf   : > { %206 = sbr.rel (%p203_p10) target bundleno = 298 (0x12a), region = 36  ;;  %601 = vmatprep.subr.bf16.mxu0 (!%p203_p10), %v698_v0  ;;  %625 = vmatprep.subr.bf16.mxu1 (!%p203_p10), %v698_v0  ;;  %v701_v3 = vld [vmem:[%s1027_s3 + $0x18] sm:$0xff] (!%p203_p10)   ;;  %v702_v10 = vld [vmem:[%s1027_s3 + $0x20] sm:$0xff] (!%p203_p10)   ;;  %v703_v11 = vld [vmem:[%s1027_s3 + $0x28] sm:$0xff] (!%p203_p10)   ;;  %s569_s22 = sshll.u32 (!%p203_p10), %s235_s21, 6 }
  0x10   : > { %602 = vmatpush3.bf16.msra.mxu0 (!%p203_p10), %v698_v0  ;;  %633 = vmatpush3.bf16.msra.mxu1 (!%p203_p10), %v698_v0  ;;  %v704_v12 = vld [vmem:[%s1027_s3 + $0x30] sm:$0xff] (!%p203_p10)   ;;  %v705_v13 = vld [vmem:[%s1027_s3 + $0x38] sm:$0xff] (!%p203_p10)   ;;  %s588_s24 = sshll.u32 (!%p203_p10), %s792_s18, 10  ;;  %s802_s8 = smov (!%p203_p10), [#allocation2]  }
  0x11   : > { %603 = vmatprep.subr.bf16.mxu0 (!%p203_p10), %v699_v1  ;;  %626 = vmatprep.subr.bf16.mxu1 (!%p203_p10), %v699_v1  ;;  %s971_s5 = scalar_lea.hbm (!%p203_p10), %s1028_s4, %s588_s24  ;;  %s726_s9 = sshll.u32 (!%p203_p10), %s802_s8, 4  ;;  %s727_s9 = int_to_ptr.vmem [resolvable:$false] %s726_s9 }
  0x14   : > { %604 = vmatpush3.bf16.msra.mxu0 (!%p203_p10), %v699_v1  ;;  %634 = vmatpush3.bf16.msra.mxu1 (!%p203_p10), %v699_v1 }
  0x15   : > { %605 = vmatprep.subr.bf16.mxu0 (!%p203_p10), %v700_v2  ;;  %627 = vmatprep.subr.bf16.mxu1 (!%p203_p10), %v700_v2 }
  0x16   : > { %s893_s7 = scalar_select %p239_p11, %s792_s18, 1 }
  0x17   : > { %s978_s18 = scalar_lea.sflag [#allocation3], %s235_s21 }
  0x18   : > { %s587_s10 = sshll.u32 %s893_s7, 6  ;;  %606 = vmatpush3.bf16.msra.mxu0 %v700_v2  ;;  %635 = vmatpush3.bf16.msra.mxu1 %v700_v2  ;;  %s250_s11 = scalar_lea.vmem %s1025_s1, %s893_s7 }
  0x19   : > { %s902_s13 = scalar_lea.vmem %s1024_s0, %s587_s10  ;;  %607 = vmatprep.subr.bf16.mxu0 %v701_v3  ;;  %628 = vmatprep.subr.bf16.mxu1 %v701_v3  ;;  %v572_v20 = vld [vmem:[%s250_s11] ss:$0 sm:$0xff]  ;;  %s253_s14 = scalar_lea.vmem %s1026_s2, %s893_s7 }
  0x1a   : > { %v908_v4 = vld [vmem:[%s902_s13] sm:$0xff]  ;;  %v911_v5 = vld [vmem:[%s902_s13 + $0x8] sm:$0xff]  ;;  %v258_v14 = vld [vmem:[%s902_s13 + $0x10] sm:$0xff]  ;;  %s237_s7 = scalar_lea.vmem [#allocation2], %s569_s22  ;;  %s728_s10 = scalar_lea.vmem %s727_s9, 2048 }
  0x1b   : > { %v264_v6 = vpack.c.bf16 %v911_v5, %v908_v4  ;;  %v916_v7 = vld [vmem:[%s902_s13 + $0x20] sm:$0xff]  ;;  %v919_v8 = vld [vmem:[%s902_s13 + $0x28] sm:$0xff]  ;;  %v937_v15 = vld [vmem:[%s902_s13 + $0x18] sm:$0xff]  ;;  %s467_s26 = sshll.u32 %s237_s7, 4  ;;  %s973_s26 = int_to_ptr.vmem [resolvable:$true] %s467_s26 }
  0x1c   : > { %v266_v9 = vpack.c.bf16 %v919_v8, %v916_v7  ;;  %608 = vmatpush3.bf16.msra.mxu0 %v701_v3  ;;  %636 = vmatpush3.bf16.msra.mxu1 %v701_v3  ;;  %v262_v16 = vld [vmem:[%s902_s13 + $0x30] sm:$0xff]  ;;  %v941_v17 = vld [vmem:[%s902_s13 + $0x38] sm:$0xff]  ;;  %v265_v18 = vpack.c.bf16 %v937_v15, %v258_v14  ;;  %v581_v37 = vld [vmem:[%s253_s14] ss:$0 sm:$0xff]  ;;  %s722_s6 = scalar_lea.vmem %s973_s26, 1024  ;;  %p729_p1 = scmp.lt.s32.totalorder %s973_s26, %s727_s9 }
  0x1d   : > { %617 = vmatprep.mubr.bf16.mxu0 %v264_v6  ;;  %609 = vmatprep.subr.bf16.mxu0 %v702_v10  ;;  %v267_v19 = vpack.c.bf16 %v941_v17, %v262_v16  ;;  %v421_v38 = vsub.f32 %v581_v37, %v258_v14  ;;  %v425_v39 = vsub.f32 %v581_v37, %v262_v16  ;;  %p723_p12 = scmp.ne.s32.totalorder %s973_s26, %s722_s6  ;;  %p730_p2 = scmp.lt.s32.totalorder %s728_s10, %s722_s6 }
  0x1e   : > { %621 = vmatprep.mubr.bf16.mxu1 %v266_v9  ;;  %629 = vmatprep.subr.bf16.mxu1 %v702_v10  ;;  %v419_v40 = vsub.f32 %v581_v37, %v908_v4  ;;  %v423_v42 = vsub.f32 %v581_v37, %v916_v7  ;;  %v422_v44 = vsub.f32 %v581_v37, %v937_v15 }
  0x1f   : > { %v426_v47 = vsub.f32 %v581_v37, %v941_v17  ;;  %v420_v50 = vsub.f32 %v581_v37, %v911_v5  ;;  %v424_v54 = vsub.f32 %v581_v37, %v919_v8  ;;  %p724_p13 = pnand %p723_p12, %p870_p4  ;;  %p731_p3 = por %p730_p2, %p729_p1 }
  0x20   : > { %610 = vmatpush3.bf16.msra.mxu0 %v702_v10  ;;  %637 = vmatpush3.bf16.msra.mxu1 %v702_v10 }
  0x21   : > { %611 = vmatprep.subr.bf16.mxu0 %v703_v11  ;;  %630 = vmatprep.subr.bf16.mxu1 %v703_v11  ;;  %p725_p0 = pneg %p724_p13 }
  0x23   : > { %p732_p5 = pnand %p731_p3, %p725_p0 }
  0x24   : > { %612 = vmatpush3.bf16.msra.mxu0 %v703_v11  ;;  %638 = vmatpush3.bf16.msra.mxu1 %v703_v11 }
  0x25   : > { %613 = vmatprep.subr.bf16.mxu0 %v704_v12  ;;  %631 = vmatprep.subr.bf16.mxu1 %v704_v12 }
  0x28   : > { %614 = vmatpush3.bf16.msra.mxu0 %v704_v12  ;;  %639 = vmatpush3.bf16.msra.mxu1 %v704_v12 }
  0x29   : > { %615 = vmatprep.subr.bf16.mxu0 %v705_v13  ;;  %632 = vmatprep.subr.bf16.mxu1 %v705_v13 }
  0x2c   : > { %616 = vmatpush3.bf16.msra.mxu0 %v705_v13  ;;  %640 = vmatpush3.bf16.msra.mxu1 %v705_v13 }
  0x2f   : > { %618 = vmatmul.mubr.bf16.vlgmr.msra.gmra.mrb[0].mxu0 %v265_v18  ;;  %622 = vmatmul.mubr.bf16.vlgmr.msra.gmra.mrb[0].mxu1 %v267_v19 }
 0x102   : > { %v619_v21 = vpop.f32.mrb[0].mxu0  ;;  %v623_v22 = vpop.f32.mrb[0].mxu1 }
 0x103   : > { %v382_v23 = vadd.f32 %v619_v21, %v572_v20  ;;  %v398_v24 = vadd.f32 %v623_v22, %v572_v20  ;;  %v373_v25 = vpop.f32.mrb[1].mxu0  ;;  %v389_v26 = vpop.f32.mrb[1].mxu1 }
 0x104   : > { %v374_v27 = vadd.f32 %v572_v20, %v373_v25  ;;  %v390_v28 = vadd.f32 %v572_v20, %v389_v26  ;;  %v620_v29 = vpop.f32.mrb[2].mxu0  ;;  %v624_v30 = vpop.f32.mrb[2].mxu1 }
 0x105   : > { %706 = vtanh.f32 %v382_v23  ;;  %v385_v31 = vadd.f32 %v620_v29, %v572_v20  ;;  %v401_v32 = vadd.f32 %v624_v30, %v572_v20  ;;  %v376_v33 = vpop.f32.mrb[3].mxu0  ;;  %v392_v34 = vpop.f32.mrb[3].mxu1 }
 0x106   : > { %708 = vtanh.f32 %v398_v24  ;;  %v377_v35 = vadd.f32 %v572_v20, %v376_v33  ;;  %v393_v36 = vadd.f32 %v572_v20, %v392_v34 }
 0x107   : > { %710 = vtanh.f32 %v374_v27 }
 0x108   : > { %712 = vtanh.f32 %v390_v28 }
 0x109   : > { %714 = vtanh.f32 %v385_v31 }
 0x10a   : > { %716 = vtanh.f32 %v401_v32 }
 0x10b   : > { %718 = vtanh.f32 %v377_v35 }
 0x10c   : > { %720 = vtanh.f32 %v393_v36 }
 0x10f   : > { %v707_v41 = vpop.eup %706 }
 0x110   : > { %v709_v43 = vpop.eup %708  ;;  %v429_v45 = vmul.f32 %v707_v41, %v421_v38 }
 0x111   : > { %v711_v46 = vpop.eup %710  ;;  %v433_v48 = vmul.f32 %v709_v43, %v425_v39 }
 0x112   : > { %v713_v49 = vpop.eup %712  ;;  %v437_v51 = vadd.f32 %v429_v45, %v258_v14  ;;  %v427_v52 = vmul.f32 %v711_v46, %v419_v40 }
 0x113   : > { %v715_v53 = vpop.eup %714  ;;  %v441_v55 = vadd.f32 %v433_v48, %v262_v16  ;;  %v431_v56 = vmul.f32 %v713_v49, %v423_v42 }
 0x114   : > { %v717_v57 = vpop.eup %716  ;;  %445 = vst [vmem:[%s237_s7 + $0x10] sm:$0xff] %v437_v51  ;;  %v435_v58 = vadd.f32 %v427_v52, %v908_v4  ;;  %v430_v59 = vmul.f32 %v715_v53, %v422_v44 }
 0x115   : > { %v719_v60 = vpop.eup %718  ;;  %449 = vst [vmem:[%s237_s7 + $0x30] sm:$0xff] %v441_v55  ;;  %v439_v61 = vadd.f32 %v431_v56, %v916_v7  ;;  %v434_v62 = vmul.f32 %v717_v57, %v426_v47 }
 0x116   : > { %v721_v63 = vpop.eup %720  ;;  %443 = vst [vmem:[%s237_s7] sm:$0xff] %v435_v58  ;;  %v438_v0 = vadd.f32 %v430_v59, %v937_v15  ;;  %v428_v1 = vmul.f32 %v719_v60, %v420_v50 }
 0x117   : > { %447 = vst [vmem:[%s237_s7 + $0x20] sm:$0xff] %v439_v61  ;;  %v442_v2 = vadd.f32 %v434_v62, %v941_v17  ;;  %v432_v3 = vmul.f32 %v721_v63, %v424_v54 }
 0x118   : > { %446 = vst [vmem:[%s237_s7 + $0x18] sm:$0xff] %v438_v0  ;;  %v436_v4 = vadd.f32 %v428_v1, %v911_v5 }
 0x119   : > { %450 = vst [vmem:[%s237_s7 + $0x38] sm:$0xff] %v442_v2  ;;  %v440_v6 = vadd.f32 %v432_v3, %v919_v8 }
 0x11a   : > { %444 = vst [vmem:[%s237_s7 + $0x8] sm:$0xff] %v436_v4 }
 0x11b   : > { %448 = vst [vmem:[%s237_s7 + $0x28] sm:$0xff] %v440_v6 }
 0x11c   : > { %735 = shalt.err (!%p732_p5)
}
 0x11d   : > { %s736_s11 = scalar_lea.hbm %s971_s5, 1024  ;;  %s740_s14 = scalar_lea.hbm %s1028_s4, 2048 }
 0x11e   : > { %p737_p6 = scmp.ne.s32.totalorder %s971_s5, %s736_s11  ;;  %p741_p10 = scmp.lt.u32.totalorder %s971_s5, %s1028_s4 }
 0x11f   : > { %p742_p11 = scmp.lt.u32.totalorder %s740_s14, %s736_s11  ;;  %p744_p13 = scmp.lt.u32.totalorder %s736_s11, %s971_s5 }
 0x120   : > { %p738_p7 = pnand %p737_p6, %p870_p4 }
 0x121   : > { %p743_p12 = por %p742_p11, %p741_p10 }
 0x122   : > { %p739_p9 = pneg %p738_p7 }
 0x123   : > { %p745_p0 = por %p744_p13, %p743_p12 }
 0x125   : > { %p746_p1 = pnand %p745_p0, %p739_p9 }
 0x127   : > { %749 = shalt.err (!%p746_p1)
}
 0x128   : > { %s803_s7 = smov 128   ;;  %s804_s24 = smov 8  }
 0x129   : > { %641 = dma.vmem_to_hbm [thread:$0]  (%p870_p4), %s973_s26, 1024, %s971_s5, %s978_s18, %s803_s7, %s803_s7, %s804_s24  }
 0x12a PF: > { %p647_p2 = scmp.ge.s32.totalorder %s800_s20, 2  ;;  %s482_s29 = sand.u32 1, %s780_s15  }
 0x12b   : > { %s483_s30 = scalar_lea.sflag [#allocation3], %s482_s29 }
 0x12c   : > { %p644_p3 = pnand %p647_p2, %p877_p8 }
 0x12e   : > { %775 = dma.done.wait (!%p644_p3), %s483_s30, 1024  }
 0x12f   : > { %777 = vsyncadd (!%p644_p3), %s483_s30, 4294966272  ;;  %s17_s20 = sadd.s32 1, %s800_s20   ;;  %s1031_s15 = smov %s784_s16 }
 0x130   : > { %p14_p5 = scmp.ge.s32.totalorder %s17_s20, 4   ;;  %s1032_s16 = smov %s788_s17 }
 0x131   : > { %s1033_s17 = smov %s883_s28  ;;  %s1034_s18 = smov %s796_s19 }
 0x132   : > { %s1035_s19 = smov %s1037_s23  ;;  %16 = sbr.rel (!%p14_p5) target bundleno = 4 (0x4), region = 77 }
 0x139   :  { %488 = vsyncpa [#allocation3], 1 }
 0x13a   :  { %490 = vsyncpa [#allocation3 + $0x1], 1 }

</bundles_post_ra>
